<compile_context>
chip_gen: v6e
topology: v6e:2x2x1
jax: 0.10.0
libtpu: 0.0.40
codegen_flags: <defaults>
</compile_context>

<pallas_src>
import functools

import jax
import jax.numpy as jnp
from jax import lax
from jax.experimental import pallas as pl
from jax.experimental.pallas import tpu as pltpu

_EPS = 1e-7


def _cdiv(a, b):
    return -(-a // b)


def _vmem_capacity_bytes():
    try:
        info = pltpu.get_tpu_info()
        cap = getattr(info, "vmem_capacity_bytes", None)
        if cap:
            return int(cap)
    except Exception:
        pass
    return 64 * 1024 * 1024  # conservative (v7x-sized) fallback


def _choose_tile(r_eff, s_eff, block_budget_bytes):
    """Pick lane tile T (multiple of ACC_W) and fixed accumulator width ACC_W."""
    s_ceil = _cdiv(s_eff, 128) * 128
    raw_t = max(128, block_budget_bytes // (r_eff * 4))
    raw_t = min(raw_t, s_ceil)
    # Bound the fold-unroll depth to <=16 while keeping ACC_W a multiple of 128.
    n_fold = 1
    while n_fold < 16 and raw_t // (2 * n_fold) >= 512:
        n_fold *= 2
    acc_w = max(128, (raw_t // n_fold) // 128 * 128)
    return acc_w * n_fold, acc_w


# ---------------------------------------------------------------------------
# Fused kernel: dice stats + BCE sum in a single pass over (pred, target)
# ---------------------------------------------------------------------------
def _fused_stats_kernel(p_ref, t_ref,
                        inter_out, denom_out, bce_out,
                        inter_acc, denom_acc, bce_acc,
                        *, K, T, ACC_W, S_eff, needs_mask):
    k = pl.program_id(1)

    @pl.when(k == 0)
    def _():
        inter_acc[...] = jnp.zeros_like(inter_acc)
        denom_acc[...] = jnp.zeros_like(denom_acc)
        bce_acc[...] = jnp.zeros_like(bce_acc)

    x = p_ref[...].astype(jnp.float32)
    t = t_ref[...].astype(jnp.float32)

    # Shared transcendental: e = exp(-|x|) feeds both sigmoid and softplus.
    e = jnp.exp(-jnp.abs(x))
    d = 1.0 + e
    r = pl.reciprocal(d, approx=True)       # EUP slot
    r = r * (2.0 - d * r)                   # one Newton step -> ~f32 accurate
    sig = jnp.where(x >= 0.0, r, e * r)     # numerically-stable sigmoid(x)

    inter_c = sig * t
    denom_c = sig + t
    bce_c = jnp.maximum(x, 0.0) - x * t + jnp.log(d)   # stable BCE-with-logits

    if needs_mask:
        # Mask the ragged lane tail (no wrapper-side padding / extra HBM pass).
        base = (pl.program_id(0) * K + k) * T
        lane = lax.broadcasted_iota(jnp.int32, inter_c.shape, 1)
        m = (base + lane) < S_eff
        zero = jnp.zeros_like(inter_c)
        inter_c = jnp.where(m, inter_c, zero)
        denom_c = jnp.where(m, denom_c, zero)
        bce_c = jnp.where(m, bce_c, zero)

    # Fold the (R, T) tile into fixed-width (R, ACC_W) accumulators with
    # lane-aligned VPU adds (accumulator footprint independent of T).
    for j in range(T // ACC_W):
        sl = slice(j * ACC_W, (j + 1) * ACC_W)
        inter_acc[...] += inter_c[:, sl]
        denom_acc[...] += denom_c[:, sl]
        bce_acc[...] += bce_c[:, sl]

    @pl.when(k == pl.num_programs(1) - 1)
    def _():
        inter_out[...] = jnp.sum(inter_acc[...], axis=-1, keepdims=True)[None]
        denom_out[...] = jnp.sum(denom_acc[...], axis=-1, keepdims=True)[None]
        bce_out[...] = jnp.sum(bce_acc[...], axis=-1, keepdims=True)[None]


def hybrid_loss_stats(prediction, target):
    """One fused HBM pass -> (inter, denom, bce_sum), each shaped (N, C)."""
    N, C, H, W = prediction.shape
    R, S = N * C, H * W

    # Sublane fold for small row counts: (R, S) -> (R*f, S/f) is a free
    # row-major view; sub-rows are re-summed after the kernel.
    f = 1
    if R < 8:
        f = max(1, 8 // R)
        while f > 1 and S % f != 0:
            f -= 1
    R_eff, S_eff = R * f, S // f

    p2 = prediction.reshape(R_eff, S_eff)
    # Binary segmentation targets are exact in bf16 -> 25% fewer HBM bytes.
    t2 = target.reshape(R_eff, S_eff).astype(jnp.bfloat16)

    # Generation-aware budgets (v5e/v6e: 128 MiB VMEM; v7x: 64 MiB).
    vmem_cap = _vmem_capacity_bytes()
    if vmem_cap > 96 * 1024 * 1024:
        block_budget = 8 * 1024 * 1024
    else:
        block_budget = 4 * 1024 * 1024
    vmem_limit = min(int(vmem_cap * 0.75), vmem_cap - 8 * 1024 * 1024)

    T, ACC_W = _choose_tile(R_eff, S_eff, block_budget)
    num_tiles = _cdiv(S_eff, T)
    # TODO(synk): on v7x, verify "parallel" shards P across the two TensorCores
    # (otherwise CORE_PARALLEL / core_map would be needed); kept "parallel"
    # since it is correct and near-free on single-TC parts.
    P = 2 if (num_tiles >= 2 and num_tiles % 2 == 0) else 1
    K = num_tiles // P
    needs_mask = (num_tiles * T != S_eff)

    kernel = functools.partial(
        _fused_stats_kernel,
        K=K, T=T, ACC_W=ACC_W, S_eff=S_eff, needs_mask=needs_mask,
    )

    in_spec = pl.BlockSpec((R_eff, T), lambda p, k: (0, p * K + k))
    out_spec = pl.BlockSpec((1, R_eff, 1), lambda p, k: (p, 0, 0))
    out_shape = tuple(
        jax.ShapeDtypeStruct((P, R_eff, 1), jnp.float32) for _ in range(3)
    )

    outs = pl.pallas_call(
        kernel,
        out_shape=out_shape,
        grid_spec=pltpu.PrefetchScalarGridSpec(
            num_scalar_prefetch=0,
            grid=(P, K),
            in_specs=[in_spec, in_spec],
            out_specs=[out_spec] * 3,
            scratch_shapes=[
                pltpu.VMEM((R_eff, ACC_W), jnp.float32) for _ in range(3)
            ],
        ),
        compiler_params=pltpu.CompilerParams(
            dimension_semantics=("parallel", "arbitrary"),
            vmem_limit_bytes=vmem_limit,
        ),
    )(p2, t2)

    def _finish(o):
        v = o.sum(axis=0)[..., 0]           # (R_eff,)
        if f > 1:
            v = v.reshape(R, f).sum(axis=1)  # undo the sublane fold
        return v.reshape(N, C)

    inter, denom, bsum = (_finish(o) for o in outs)
    return inter, denom, bsum


# ---------------------------------------------------------------------------
# Loss calculators (each mirrors one AbstractLossFunction child, consuming the
# shared fused statistics so pred/target are read from HBM exactly once)
# ---------------------------------------------------------------------------
def _dice_loss_from_stats(stats, input_shape, penalty_weights):
    inter, denom, _ = stats
    dice_score = (2.0 * inter + _EPS) / (denom + _EPS)        # (N, C)
    dice_loss_per_class = jnp.mean(1.0 - dice_score, axis=0)  # (C,)
    return jnp.mean(penalty_weights * dice_loss_per_class)    # scalar


def _bce_loss_from_stats(stats, input_shape, penalty_weights):
    del penalty_weights  # BCE term unweighted (CE default in GANDLF hybrids)
    _, _, bsum = stats
    N, C, H, W = input_shape
    return jnp.sum(bsum) / float(N * C * H * W)               # mean over elements


# ---------------------------------------------------------------------------
# Hybrid loss "module" mirroring AbstractHybridLoss.forward
# ---------------------------------------------------------------------------
class HybridDiceCELoss:
    """Concrete instantiation of AbstractHybridLoss (Dice + BCE-with-logits)."""

    def __init__(self, params: dict):
        self.params = params
        self.num_classes = len(params["model"]["class_list"])
        # _initialize_penalty_weights: default ones(num_classes)
        self.penalty_weights = params.get(
            "penalty_weights", jnp.ones((self.num_classes,), jnp.float32)
        )
        self.loss_calculators = self._initialize_all_loss_calculators()

    def _initialize_all_loss_calculators(self):
        return [_dice_loss_from_stats, _bce_loss_from_stats]

    def forward(self, prediction, target):
        # Single fused Pallas pass produces the shared reduction statistics.
        stats = hybrid_loss_stats(prediction, target)
        accumulated_loss = jnp.asarray(0.0, jnp.float32)
        for loss_calculator in self._initialize_all_loss_calculators():
            accumulated_loss = accumulated_loss + loss_calculator(
                stats, prediction.shape, self.penalty_weights
            )
        return accumulated_loss

    __call__ = forward


# ---------------------------------------------------------------------------
if __name__ == "__main__":
    key = jax.random.PRNGKey(0)
    kp, kt = jax.random.split(key)

    N, C, H, W = 2, 4, 16, 16  # small NCHW segmentation shapes
    prediction = jax.random.normal(kp, (N, C, H, W), dtype=jnp.float32)  # logits
    target = jax.random.bernoulli(kt, p=0.3, shape=(N, C, H, W)).astype(jnp.float32)

    params = {"model": {"class_list": list(range(C))}}
    loss_module = HybridDiceCELoss(params)

    loss = jax.jit(loss_module.forward)(prediction, target)
    jax.block_until_ready(loss)

    # quick sanity check against a pure-JAX reference
    def _ref(pred, targ):
        s = jax.nn.sigmoid(pred)
        inter = jnp.sum(s * targ, axis=(2, 3))
        psum = jnp.sum(s, axis=(2, 3))
        tsum = jnp.sum(targ, axis=(2, 3))
        dice = (2.0 * inter + _EPS) / (psum + tsum + _EPS)
        dice_loss = jnp.mean(jnp.ones((C,)) * jnp.mean(1.0 - dice, axis=0))
        bce = jnp.maximum(pred, 0.0) - pred * targ + jnp.log1p(jnp.exp(-jnp.abs(pred)))
        return dice_loss + jnp.mean(bce)

    ref = _ref(prediction, target)
    assert jnp.allclose(loss, ref, atol=2e-5, rtol=2e-5), (loss, ref)

    print("KERNEL_OK")
</pallas_src>

<mosaic_0001>
module attributes {stable_mosaic.version = 11 : i64} {
  func.func @_fused_stats_kernel(%arg0: i32, %arg1: i32, %arg2: memref<8x256xf32, #tpu.memory_space<vmem>>, %arg3: memref<8x256xbf16, #tpu.memory_space<vmem>>, %arg4: memref<1x8x1xf32, #tpu.memory_space<vmem>>, %arg5: memref<1x8x1xf32, #tpu.memory_space<vmem>>, %arg6: memref<1x8x1xf32, #tpu.memory_space<vmem>>, %arg7: memref<8x256xf32, #tpu.memory_space<vmem>>, %arg8: memref<8x256xf32, #tpu.memory_space<vmem>>, %arg9: memref<8x256xf32, #tpu.memory_space<vmem>>) attributes {dimension_semantics = [#tpu.dimension_semantics<parallel>, #tpu.dimension_semantics<arbitrary>], iteration_bounds = array<i64: 1, 1>, scalar_prefetch = 0 : i64, scratch_operands = 3 : i64, tpu.core_type = #tpu.core_type<tc>, window_params = [{transform_indices = @transform_0, window_bounds = array<i64: 8, 256>}, {transform_indices = @transform_1, window_bounds = array<i64: 8, 256>}, {transform_indices = @transform_2, window_bounds = array<i64: 1, 8, 1>}, {transform_indices = @transform_3, window_bounds = array<i64: 1, 8, 1>}, {transform_indices = @transform_4, window_bounds = array<i64: 1, 8, 1>}]} {
    %c0_i32 = arith.constant 0 : i32
    %0 = arith.cmpi eq, %arg1, %c0_i32 : i32
    %1 = arith.extui %0 : i1 to i32
    %c0_i32_0 = arith.constant 0 : i32
    %2 = arith.cmpi ne, %1, %c0_i32_0 : i32
    scf.if %2 {
      %cst_22 = arith.constant 0.000000e+00 : f32
      %41 = vector.broadcast %cst_22 : f32 to vector<8x256xf32>
      %c0_23 = arith.constant 0 : index
      %c0_24 = arith.constant 0 : index
      %42 = vector.load %arg7[%c0_23, %c0_24] : memref<8x256xf32, #tpu.memory_space<vmem>>, vector<8x256xf32>
      tpu.vector_store %arg7[%c0_23, %c0_24], %41 {strides = array<i32>} : memref<8x256xf32, #tpu.memory_space<vmem>>, vector<8x256xf32>,
      %cst_25 = arith.constant 0.000000e+00 : f32
      %43 = vector.broadcast %cst_25 : f32 to vector<8x256xf32>
      %c0_26 = arith.constant 0 : index
      %c0_27 = arith.constant 0 : index
      %44 = vector.load %arg8[%c0_26, %c0_27] : memref<8x256xf32, #tpu.memory_space<vmem>>, vector<8x256xf32>
      tpu.vector_store %arg8[%c0_26, %c0_27], %43 {strides = array<i32>} : memref<8x256xf32, #tpu.memory_space<vmem>>, vector<8x256xf32>,
      %cst_28 = arith.constant 0.000000e+00 : f32
      %45 = vector.broadcast %cst_28 : f32 to vector<8x256xf32>
      %c0_29 = arith.constant 0 : index
      %c0_30 = arith.constant 0 : index
      %46 = vector.load %arg9[%c0_29, %c0_30] : memref<8x256xf32, #tpu.memory_space<vmem>>, vector<8x256xf32>
      tpu.vector_store %arg9[%c0_29, %c0_30], %45 {strides = array<i32>} : memref<8x256xf32, #tpu.memory_space<vmem>>, vector<8x256xf32>,
    } else {
    }
    %c0 = arith.constant 0 : index
    %c0_1 = arith.constant 0 : index
    %3 = vector.load %arg2[%c0, %c0_1] : memref<8x256xf32, #tpu.memory_space<vmem>>, vector<8x256xf32>
    %c0_2 = arith.constant 0 : index
    %c0_3 = arith.constant 0 : index
    %4 = vector.load %arg3[%c0_2, %c0_3] : memref<8x256xbf16, #tpu.memory_space<vmem>>, vector<8x256xbf16>
    %5 = arith.extf %4 : vector<8x256xbf16> to vector<8x256xf32>
    %6 = math.absf %3 : vector<8x256xf32>
    %cst = arith.constant 0.000000e+00 : f32
    %7 = vector.broadcast %cst : f32 to vector<8x256xf32>
    %8 = arith.subf %7, %6 : vector<8x256xf32>
    %9 = math.exp %8 : vector<8x256xf32>
    %cst_4 = arith.constant 1.000000e+00 : f32
    %10 = vector.broadcast %cst_4 : f32 to vector<8x256xf32>
    %11 = arith.addf %10, %9 : vector<8x256xf32>
    %12 = tpu.reciprocal %11 {approx = true} : vector<8x256xf32> -> vector<8x256xf32>
    %13 = arith.mulf %11, %12 : vector<8x256xf32>
    %cst_5 = arith.constant 2.000000e+00 : f32
    %14 = vector.broadcast %cst_5 : f32 to vector<8x256xf32>
    %15 = arith.subf %14, %13 : vector<8x256xf32>
    %16 = arith.mulf %12, %15 : vector<8x256xf32>
    %cst_6 = arith.constant 0.000000e+00 : f32
    %17 = vector.broadcast %cst_6 : f32 to vector<8x256xf32>
    %18 = arith.cmpf oge, %3, %17 : vector<8x256xf32>
    %19 = arith.mulf %9, %16 : vector<8x256xf32>
    %20 = arith.select %18, %16, %19 : vector<8x256xi1>, vector<8x256xf32>
    %21 = arith.mulf %20, %5 : vector<8x256xf32>
    %22 = arith.addf %20, %5 : vector<8x256xf32>
    %cst_7 = arith.constant 0.000000e+00 : f32
    %23 = vector.broadcast %cst_7 : f32 to vector<8x256xf32>
    %24 = arith.maximumf %3, %23 : vector<8x256xf32>
    %25 = arith.mulf %3, %5 : vector<8x256xf32>
    %26 = arith.subf %24, %25 : vector<8x256xf32>
    %27 = math.log %11 : vector<8x256xf32>
    %28 = arith.addf %26, %27 : vector<8x256xf32>
    %c0_8 = arith.constant 0 : index
    %c0_9 = arith.constant 0 : index
    %29 = vector.load %arg7[%c0_8, %c0_9] : memref<8x256xf32, #tpu.memory_space<vmem>>, vector<8x256xf32>
    %30 = arith.addf %29, %21 : vector<8x256xf32>
    %c0_10 = arith.constant 0 : index
    %c0_11 = arith.constant 0 : index
    %31 = vector.load %arg7[%c0_10, %c0_11] : memref<8x256xf32, #tpu.memory_space<vmem>>, vector<8x256xf32>
    tpu.vector_store %arg7[%c0_10, %c0_11], %30 {strides = array<i32>} : memref<8x256xf32, #tpu.memory_space<vmem>>, vector<8x256xf32>,
    %c0_12 = arith.constant 0 : index
    %c0_13 = arith.constant 0 : index
    %32 = vector.load %arg8[%c0_12, %c0_13] : memref<8x256xf32, #tpu.memory_space<vmem>>, vector<8x256xf32>
    %33 = arith.addf %32, %22 : vector<8x256xf32>
    %c0_14 = arith.constant 0 : index
    %c0_15 = arith.constant 0 : index
    %34 = vector.load %arg8[%c0_14, %c0_15] : memref<8x256xf32, #tpu.memory_space<vmem>>, vector<8x256xf32>
    tpu.vector_store %arg8[%c0_14, %c0_15], %33 {strides = array<i32>} : memref<8x256xf32, #tpu.memory_space<vmem>>, vector<8x256xf32>,
    %c0_16 = arith.constant 0 : index
    %c0_17 = arith.constant 0 : index
    %35 = vector.load %arg9[%c0_16, %c0_17] : memref<8x256xf32, #tpu.memory_space<vmem>>, vector<8x256xf32>
    %36 = arith.addf %35, %28 : vector<8x256xf32>
    %c0_18 = arith.constant 0 : index
    %c0_19 = arith.constant 0 : index
    %37 = vector.load %arg9[%c0_18, %c0_19] : memref<8x256xf32, #tpu.memory_space<vmem>>, vector<8x256xf32>
    tpu.vector_store %arg9[%c0_18, %c0_19], %36 {strides = array<i32>} : memref<8x256xf32, #tpu.memory_space<vmem>>, vector<8x256xf32>,
    %c0_i32_20 = arith.constant 0 : i32
    %38 = arith.cmpi eq, %arg1, %c0_i32_20 : i32
    %39 = arith.extui %38 : i1 to i32
    %c0_i32_21 = arith.constant 0 : i32
    %40 = arith.cmpi ne, %39, %c0_i32_21 : i32
    scf.if %40 {
      %c0_22 = arith.constant 0 : index
      %c0_23 = arith.constant 0 : index
      %41 = vector.load %arg7[%c0_22, %c0_23] : memref<8x256xf32, #tpu.memory_space<vmem>>, vector<8x256xf32>
      %cst_24 = arith.constant dense<0.000000e+00> : vector<8xf32>
      %42 = vector.multi_reduction <add>, %41, %cst_24 [1] : vector<8x256xf32> to vector<8xf32>
      %43 = vector.shape_cast %42 : vector<8xf32> to vector<8x1xf32>
      %44 = vector.shape_cast %43 : vector<8x1xf32> to vector<1x8x1xf32>
      %c0_25 = arith.constant 0 : index
      %c0_26 = arith.constant 0 : index
      %c0_27 = arith.constant 0 : index
      %45 = vector.load %arg4[%c0_25, %c0_26, %c0_27] : memref<1x8x1xf32, #tpu.memory_space<vmem>>, vector<1x8x1xf32>
      tpu.vector_store %arg4[%c0_25, %c0_26, %c0_27], %44 {strides = array<i32>} : memref<1x8x1xf32, #tpu.memory_space<vmem>>, vector<1x8x1xf32>,
      %c0_28 = arith.constant 0 : index
      %c0_29 = arith.constant 0 : index
      %46 = vector.load %arg8[%c0_28, %c0_29] : memref<8x256xf32, #tpu.memory_space<vmem>>, vector<8x256xf32>
      %cst_30 = arith.constant dense<0.000000e+00> : vector<8xf32>
      %47 = vector.multi_reduction <add>, %46, %cst_30 [1] : vector<8x256xf32> to vector<8xf32>
      %48 = vector.shape_cast %47 : vector<8xf32> to vector<8x1xf32>
      %49 = vector.shape_cast %48 : vector<8x1xf32> to vector<1x8x1xf32>
      %c0_31 = arith.constant 0 : index
      %c0_32 = arith.constant 0 : index
      %c0_33 = arith.constant 0 : index
      %50 = vector.load %arg5[%c0_31, %c0_32, %c0_33] : memref<1x8x1xf32, #tpu.memory_space<vmem>>, vector<1x8x1xf32>
      tpu.vector_store %arg5[%c0_31, %c0_32, %c0_33], %49 {strides = array<i32>} : memref<1x8x1xf32, #tpu.memory_space<vmem>>, vector<1x8x1xf32>,
      %c0_34 = arith.constant 0 : index
      %c0_35 = arith.constant 0 : index
      %51 = vector.load %arg9[%c0_34, %c0_35] : memref<8x256xf32, #tpu.memory_space<vmem>>, vector<8x256xf32>
      %cst_36 = arith.constant dense<0.000000e+00> : vector<8xf32>
      %52 = vector.multi_reduction <add>, %51, %cst_36 [1] : vector<8x256xf32> to vector<8xf32>
      %53 = vector.shape_cast %52 : vector<8xf32> to vector<8x1xf32>
      %54 = vector.shape_cast %53 : vector<8x1xf32> to vector<1x8x1xf32>
      %c0_37 = arith.constant 0 : index
      %c0_38 = arith.constant 0 : index
      %c0_39 = arith.constant 0 : index
      %55 = vector.load %arg6[%c0_37, %c0_38, %c0_39] : memref<1x8x1xf32, #tpu.memory_space<vmem>>, vector<1x8x1xf32>
      tpu.vector_store %arg6[%c0_37, %c0_38, %c0_39], %54 {strides = array<i32>} : memref<1x8x1xf32, #tpu.memory_space<vmem>>, vector<1x8x1xf32>,
    } else {
    }
    return
  }
  func.func @transform_0(%arg0: i32, %arg1: i32) -> (i32, i32) {
    %c1_i32 = arith.constant 1 : i32
    %0 = arith.muli %arg0, %c1_i32 : i32
    %1 = arith.addi %0, %arg1 : i32
    %c0_i32 = arith.constant 0 : i32
    %c0_i32_0 = arith.constant 0 : i32
    return %c0_i32, %1 : i32, i32
  }
  func.func @transform_1(%arg0: i32, %arg1: i32) -> (i32, i32) {
    %c1_i32 = arith.constant 1 : i32
    %0 = arith.muli %arg0, %c1_i32 : i32
    %1 = arith.addi %0, %arg1 : i32
    %c0_i32 = arith.constant 0 : i32
    %c0_i32_0 = arith.constant 0 : i32
    return %c0_i32, %1 : i32, i32
  }
  func.func @transform_2(%arg0: i32, %arg1: i32) -> (i32, i32, i32) {
    %c0_i32 = arith.constant 0 : i32
    %c0_i32_0 = arith.constant 0 : i32
    %c0_i32_1 = arith.constant 0 : i32
    return %arg0, %c0_i32, %c0_i32_0 : i32, i32, i32
  }
  func.func @transform_3(%arg0: i32, %arg1: i32) -> (i32, i32, i32) {
    %c0_i32 = arith.constant 0 : i32
    %c0_i32_0 = arith.constant 0 : i32
    %c0_i32_1 = arith.constant 0 : i32
    return %arg0, %c0_i32, %c0_i32_0 : i32, i32, i32
  }
  func.func @transform_4(%arg0: i32, %arg1: i32) -> (i32, i32, i32) {
    %c0_i32 = arith.constant 0 : i32
    %c0_i32_0 = arith.constant 0 : i32
    %c0_i32_1 = arith.constant 0 : i32
    return %arg0, %c0_i32, %c0_i32_0 : i32, i32, i32
  }
}

</mosaic_0001>

<bundles_post_ra>
// kernel: forward.1
= control target key start
LH: loop header
LB: loop body
LE: loop exit
PB: predicated region body
PF: predicated region fallthrough
CT: control target
= control target key end

     0   :  { %vm139_vm2 = vcmask 7168   ;;  %s232_s0 = inlined_call_operand.vmem [shape: f32[8,256], index: 0, kind: input, shape index: {}]   ;;  %s233_s1 = inlined_call_operand.vmem [shape: bf16[8,256], index: 1, kind: input, shape index: {}]   ;;  %s234_s4 = inlined_call_operand.vmem [shape: f32[1,8,1], index: 4, kind: output, shape index: {2}]   ;;  %s235_s2 = inlined_call_operand.vmem [shape: f32[1,8,1], index: 2, kind: output, shape index: {0}]   ;;  %s236_s3 = inlined_call_operand.vmem [shape: f32[1,8,1], index: 3, kind: output, shape index: {1}]  }
   0x1   :  { %v68_v0 = vld [vmem:[%s232_s0] sm:$0xff]  ;;  %v69_v1 = vld [vmem:[%s232_s0 + $0x8] sm:$0xff] }
   0x2   :  { %v73_v2 = vand.u32 2147483647, %v68_v0  ;;  %v74_v3 = vand.u32 2147483647, %v69_v1  ;;  %v70_v12 = vld [vmem:[%s233_s1] sm:$0xff]  ;;  %v101_v15 = vmax.f32 %v68_v0, 0.0 }
   0x3   :  { %v71_v13 = vunpack.c.l.bf16 %v70_v12  ;;  %v72_v14 = vunpack.c.h.bf16 %v70_v12  ;;  %v102_v17 = vmax.f32 %v69_v1, 0.0  ;;  %vm91_vm0 = vcmp.ge.f32.partialorder %v68_v0, 0.0 }
   0x4   :  { %v75_v4 = vsub.f32 0.0, %v73_v2  ;;  %v76_v5 = vsub.f32 0.0, %v74_v3  ;;  %vm92_vm1 = vcmp.ge.f32.partialorder %v69_v1, 0.0 }
   0x5   :  { %v103_v16 = vmul.f32 %v71_v13, %v68_v0  ;;  %v104_v18 = vmul.f32 %v72_v14, %v69_v1 }
   0x6   :  { %v77_v6 = vmul.f32 1.442695, %v75_v4  ;;  %v79_v7 = vmul.f32 1.442695, %v76_v5 }
   0x7   :  { %v105_v22 = vsub.f32 %v101_v15, %v103_v16  ;;  %v106_v25 = vsub.f32 %v102_v17, %v104_v18 }
   0x8   :  { %177 = vpow2.f32 %v77_v6 }
   0x9   :  { %179 = vpow2.f32 %v79_v7 }
  0x15   :  { %v178_v8 = vpop.eup %177 }
  0x16   :  { %v180_v9 = vpop.eup %179  ;;  %v81_v10 = vadd.f32 1.0, %v178_v8 }
  0x17   :  { %v82_v11 = vadd.f32 1.0, %v180_v9 }
  0x18   :  { %181 = vrcp.f32 %v81_v10 }
  0x19   :  { %183 = vrcp.f32 %v82_v11 }
  0x1a   :  { %185 = vlog2.f32 %v81_v10 }
  0x1b   :  { %187 = vlog2.f32 %v82_v11 }
  0x25   :  { %v182_v19 = vpop.eup %181 }
  0x26   :  { %v184_v20 = vpop.eup %183  ;;  %v85_v21 = vmul.f32 %v182_v19, %v81_v10 }
  0x27   :  { %v186_v23 = vpop.eup %185  ;;  %v86_v24 = vmul.f32 %v184_v20, %v82_v11 }
  0x28   :  { %v188_v26 = vpop.eup %187  ;;  %v87_v27 = vsub.f32 2.0, %v85_v21  ;;  %v108_v28 = vmul.f32 0.6931472, %v186_v23 }
  0x29   :  { %v88_v29 = vsub.f32 2.0, %v86_v24  ;;  %v110_v30 = vmul.f32 0.6931472, %v188_v26 }
  0x2a   :  { %v89_v31 = vmul.f32 %v182_v19, %v87_v27  ;;  %v111_v32 = vadd.f32 %v108_v28, %v105_v22 }
  0x2b   :  { %v90_v33 = vmul.f32 %v184_v20, %v88_v29  ;;  %v112_v34 = vadd.f32 %v110_v30, %v106_v25 }
  0x2c   :  { %v93_v35 = vmul.f32 %v178_v8, %v89_v31 }
  0x2d   :  { %v94_v36 = vmul.f32 %v180_v9, %v90_v33  ;;  %v149_v37 = vadd.f32 %v112_v34, %v111_v32 }
  0x2e   :  { %v95_v38 = vsel %vm91_vm0, %v89_v31, %v93_v35 }
  0x2f   :  { %v96_v39 = vsel %vm92_vm1, %v90_v33, %v94_v36  ;;  %v97_v40 = vmul.f32 %v95_v38, %v71_v13  ;;  %150 = vadd.xlane.f32.xlu1 %v149_v37  ;;  %v99_v42 = vadd.f32 %v95_v38, %v71_v13 }
  0x30   :  { %v98_v41 = vmul.f32 %v96_v39, %v72_v14  ;;  %v100_v43 = vadd.f32 %v96_v39, %v72_v14 }
  0x32   :  { %v136_v44 = vadd.f32 %v98_v41, %v97_v40  ;;  %v143_v45 = vadd.f32 %v100_v43, %v99_v42 }
  0x34   :  { %137 = vadd.xlane.f32.xlu0 %v136_v44 }
  0x38   :  { %144 = vadd.xlane.f32.xlu0 %v143_v45 }
  0xb8   :  { %v151_v46 = vpop.xlane.xlu1 %150 }
  0xb9   :  { %152 = vst.msk [vmem:[%s234_s4] sm:$0xff] %vm139_vm2, %v151_v46 }
  0xbd   :  { %v138_v47 = vpop.xlane.xlu0 %137 }
  0xbe   :  { %140 = vst.msk [vmem:[%s235_s2] sm:$0xff] %vm139_vm2, %v138_v47 }
  0xc1   :  { %v145_v48 = vpop.xlane.xlu0 %144 }
  0xc2   :  { %146 = vst.msk [vmem:[%s236_s3] sm:$0xff] %vm139_vm2, %v145_v48 }

</bundles_post_ra>
